<compile_context>
chip_gen: v7x
topology: tpu7x:2x2x1
jax: 0.10.0
libtpu: 0.0.40
codegen_flags: <defaults>
</compile_context>

<pallas_src>
import functools

import jax
import jax.numpy as jnp
import numpy as np
from jax.experimental import pallas as pl
from jax.experimental.pallas import tpu as pltpu

_LANE = 128
_TILE_VMEM_BUDGET = 24 * 1024 * 1024   # target working set (v7x-safe)
_VMEM_LIMIT_CAP = 40 * 1024 * 1024
_RESIDENT_W_BYTES = 8 * 1024 * 1024
_MAX_SINGLE_K = 2048


def _round_up(x, m):
    return ((x + m - 1) // m) * m


def _pick_tile(dim, candidates):
    """Pick the tile (from descending candidates) minimizing pad overshoot."""
    best = None
    for c in candidates:
        waste = _round_up(dim, c) - dim
        if best is None or waste < best[0]:
            best = (waste, c)
    return best[1]


# --------------------------------------------------------------------------
# Kernels
# --------------------------------------------------------------------------
def _sine_kernel_single_k(x_ref, w_ref, b_ref, o_ref, *, omega_0, epi_dtype):
    """Grid = (rows i, out-cols j); whole reduction in one MXU call."""
    acc = jnp.dot(x_ref[...], w_ref[...], preferred_element_type=jnp.float32)
    z = omega_0 * (acc + b_ref[...].astype(jnp.float32))
    o_ref[...] = jnp.sin(z.astype(epi_dtype)).astype(o_ref.dtype)


def _sine_kernel_multi_k(x_ref, w_ref, b_ref, o_ref, acc_ref, *,
                         omega_0, epi_dtype):
    """Grid = (rows i, out-cols j, reduction k); acc_ref is f32 VMEM scratch."""
    k = pl.program_id(2)
    prod = jnp.dot(x_ref[...], w_ref[...], preferred_element_type=jnp.float32)

    @pl.when(k == 0)
    def _():
        acc_ref[...] = prod          # init with first dot: no zero-store pass

    @pl.when(k > 0)
    def _():
        acc_ref[...] += prod

    @pl.when(k == pl.num_programs(2) - 1)
    def _():
        z = omega_0 * (acc_ref[...] + b_ref[...].astype(jnp.float32))
        o_ref[...] = jnp.sin(z.astype(epi_dtype)).astype(o_ref.dtype)


# --------------------------------------------------------------------------
# Wrapper
# --------------------------------------------------------------------------
def sine_layer(x, w_t, b, omega_0, *, tm=None, tn=None, tk=None,
               compute_dtype=None, epilogue_dtype=None):
    """y = sin(omega_0 * (x @ w_t + b)).

    x:   [N, K]     input rows
    w_t: [K, Nout]  pre-transposed nn.Linear weight (W.T)
    b:   [Nout]     bias (pass zeros for bias=False)
    compute_dtype:  optional dtype (e.g. jnp.bfloat16) for x/W to halve HBM
                    traffic; valid on v5e/v6e/v7x (MXU is bf16-native on all);
                    accumulation stays f32.
    epilogue_dtype: dtype for the sin polynomial.  Defaults to f32, or bf16
                    when the output dtype is bf16 (the VALU-bound v7x case).
    """
    N, K = x.shape
    Kw, Nout = w_t.shape
    assert K == Kw, "x / weight inner dims mismatch"
    out_dtype = x.dtype

    if compute_dtype is not None:
        x = x.astype(compute_dtype)
        w_t = w_t.astype(compute_dtype)
    in_dtype = x.dtype
    in_bytes = jnp.dtype(in_dtype).itemsize
    out_bytes = jnp.dtype(out_dtype).itemsize

    if epilogue_dtype is None:
        epilogue_dtype = (jnp.bfloat16 if out_dtype == jnp.bfloat16
                          else jnp.float32)

    # sublane multiple for the row tile (f32 -> 8, bf16 -> 16, int8 -> 32)
    sub = 8 * (4 // min(in_bytes, out_bytes, 4))

    # ---- lane-dense output width: pad W / bias (tiny) to a 128 multiple ----
    f_pad = _round_up(Nout, _LANE)

    # ---- reduction (K) handling ----
    single_k = (K <= _MAX_SINGLE_K) if tk is None else (tk >= K)
    if single_k:
        tk_eff, k_pad = K, K            # full K, no padding of x at all
    else:
        tk_eff = tk if tk is not None else _pick_tile(K, (512, 384, 256, 128))
        k_pad = _round_up(K, tk_eff)

    # ---- output-column tile: keep whole W resident in VMEM when it fits ----
    if tn is not None:
        tn_eff = tn
    elif k_pad * f_pad * in_bytes <= _RESIDENT_W_BYTES:
        tn_eff = f_pad                  # W block index constant across rows
    else:
        tn_eff = _pick_tile(f_pad, (512, 384, 256, 128))

    # ---- row tile ----
    if tm is not None:
        tm_eff = tm
    elif N >= 2048:
        tm_eff = 1024
    elif N >= 512:
        tm_eff = 512
    else:
        tm_eff = _round_up(N, sub)

    # ---- VMEM budget (double-buffered tiles; v7x has 64 MiB physical) ----
    def est_bytes(tm_, tn_, tk_):
        e = 2 * tm_ * tk_ * in_bytes        # x tile
        e += 2 * tk_ * tn_ * in_bytes       # weight slice
        e += 2 * tn_ * 4                    # bias slice
        e += 2 * tm_ * tn_ * out_bytes      # output tile
        if not single_k:
            e += tm_ * tn_ * 4              # accumulator scratch
        return e

    while est_bytes(tm_eff, tn_eff, tk_eff) > _TILE_VMEM_BUDGET and tm_eff > 64:
        tm_eff = max(64, _round_up(tm_eff // 2, sub))
    while est_bytes(tm_eff, tn_eff, tk_eff) > _TILE_VMEM_BUDGET and tn_eff > _LANE:
        tn_eff = max(_LANE, _round_up(tn_eff // 2, _LANE))

    est = est_bytes(tm_eff, tn_eff, tk_eff)
    vmem_limit = min(_VMEM_LIMIT_CAP, int(est * 1.5) + (4 << 20))

    # ---- pad only W / bias (and x along K in the rare multi-K fallback) ----
    w_pad = w_t
    if (k_pad, f_pad) != (K, Nout):
        w_pad = jnp.pad(w_t, ((0, k_pad - K), (0, f_pad - Nout)))
    b2 = jnp.pad(b, (0, f_pad - Nout)).reshape(1, f_pad).astype(jnp.float32)
    x_in = x
    if k_pad != K:
        x_in = jnp.pad(x, ((0, 0), (0, k_pad - K)))   # reduction must be exact

    cost = pl.CostEstimate(
        flops=2 * N * K * Nout,
        transcendentals=N * Nout,
        bytes_accessed=(N * K * in_bytes + k_pad * f_pad * in_bytes
                        + f_pad * 4 + N * f_pad * out_bytes),
    )

    if single_k:
        grid = (pl.cdiv(N, tm_eff), pl.cdiv(f_pad, tn_eff))
        in_specs = [
            pl.BlockSpec((tm_eff, K), lambda i, j: (i, 0)),
            pl.BlockSpec((K, tn_eff), lambda i, j: (0, j)),
            pl.BlockSpec((1, tn_eff), lambda i, j: (0, j)),
        ]
        out_specs = pl.BlockSpec((tm_eff, tn_eff), lambda i, j: (i, j))
        scratch = []
        dims = ("parallel", "parallel")
        kernel = functools.partial(_sine_kernel_single_k,
                                   omega_0=float(omega_0),
                                   epi_dtype=epilogue_dtype)
    else:
        grid = (pl.cdiv(N, tm_eff), pl.cdiv(f_pad, tn_eff), k_pad // tk_eff)
        in_specs = [
            pl.BlockSpec((tm_eff, tk_eff), lambda i, j, k: (i, k)),
            pl.BlockSpec((tk_eff, tn_eff), lambda i, j, k: (k, j)),
            pl.BlockSpec((1, tn_eff), lambda i, j, k: (0, j)),
        ]
        out_specs = pl.BlockSpec((tm_eff, tn_eff), lambda i, j, k: (i, j))
        scratch = [pltpu.VMEM((tm_eff, tn_eff), jnp.float32)]
        dims = ("parallel", "parallel", "arbitrary")
        kernel = functools.partial(_sine_kernel_multi_k,
                                   omega_0=float(omega_0),
                                   epi_dtype=epilogue_dtype)

    out = pl.pallas_call(
        kernel,
        out_shape=jax.ShapeDtypeStruct((N, f_pad), out_dtype),
        grid_spec=pltpu.PrefetchScalarGridSpec(
            num_scalar_prefetch=0,
            grid=grid,
            in_specs=in_specs,
            out_specs=out_specs,
            scratch_shapes=scratch,
        ),
        compiler_params=pltpu.CompilerParams(
            dimension_semantics=dims,
            vmem_limit_bytes=vmem_limit,
        ),
        cost_estimate=cost,
    )(x_in, w_pad, b2)

    if f_pad != Nout:
        out = out[:, :Nout]
    return out


def init_sine_layer_params(key, in_features, out_features, bias, is_first,
                           omega_0):
    """Deterministic init mirroring SineLayerBase.init_weights for nn.Linear."""
    kw, kb = jax.random.split(key)
    if is_first:
        bound = 1.0 / in_features
    else:
        bound = np.sqrt(6.0 / in_features) / omega_0
    # nn.Linear weight is [out_features, in_features]; store it transposed.
    w = jax.random.uniform(kw, (out_features, in_features),
                           minval=-bound, maxval=bound, dtype=jnp.float32)
    w_t = w.T
    if bias and is_first:
        bb = 1.0 / np.sqrt(in_features)     # nn.Linear default bias init
        b = jax.random.uniform(kb, (out_features,),
                               minval=-bb, maxval=bb, dtype=jnp.float32)
    else:
        b = jnp.zeros((out_features,), jnp.float32)  # zero bias == no bias
    return w_t, b


if __name__ == "__main__":
    key = jax.random.PRNGKey(0)
    kx1, kp1, kx2, kp2 = jax.random.split(key, 4)
    omega_0 = 30.0

    # --- test 1: first SIREN layer, tiny coordinate-like inputs ---
    N1, K1, F1 = 16, 4, 32
    x1 = jax.random.normal(kx1, (N1, K1), dtype=jnp.float32)
    w1, b1 = init_sine_layer_params(kp1, K1, F1, True, True, omega_0)
    out1 = jax.block_until_ready(sine_layer(x1, w1, b1, omega_0))
    ref1 = jnp.sin(omega_0 * (jnp.dot(x1, w1) + b1[None, :]))
    np.testing.assert_allclose(np.asarray(out1), np.asarray(ref1),
                               rtol=2e-5, atol=2e-5)

    # --- test 2: hidden layer with ragged N and non-128-multiple Nout ---
    N2, K2, F2 = 200, 48, 80
    x2 = jax.random.normal(kx2, (N2, K2), dtype=jnp.float32)
    w2, b2 = init_sine_layer_params(kp2, K2, F2, True, False, omega_0)
    out2 = jax.block_until_ready(sine_layer(x2, w2, b2, omega_0))
    ref2 = jnp.sin(omega_0 * (jnp.dot(x2, w2) + b2[None, :]))
    np.testing.assert_allclose(np.asarray(out2), np.asarray(ref2),
                               rtol=1e-4, atol=1e-4)

    print("KERNEL_OK")
</pallas_src>

<mosaic_0001>
module attributes {stable_mosaic.version = 11 : i64} {
  func.func @_sine_kernel_single_k(%arg0: i32, %arg1: i32, %arg2: memref<16x4xf32, #tpu.memory_space<vmem>>, %arg3: memref<4x128xf32, #tpu.memory_space<vmem>>, %arg4: memref<1x128xf32, #tpu.memory_space<vmem>>, %arg5: memref<16x128xf32, #tpu.memory_space<vmem>>) attributes {dimension_semantics = [#tpu.dimension_semantics<parallel>, #tpu.dimension_semantics<parallel>], iteration_bounds = array<i64: 1, 1>, scalar_prefetch = 0 : i64, scratch_operands = 0 : i64, tpu.core_type = #tpu.core_type<tc>, window_params = [{transform_indices = @transform_0, window_bounds = array<i64: 16, 4>}, {transform_indices = @transform_1, window_bounds = array<i64: 4, 128>}, {transform_indices = @transform_2, window_bounds = array<i64: 1, 128>}, {transform_indices = @transform_3, window_bounds = array<i64: 16, 128>}]} {
    %c0 = arith.constant 0 : index
    %c0_0 = arith.constant 0 : index
    %0 = vector.load %arg2[%c0, %c0_0] : memref<16x4xf32, #tpu.memory_space<vmem>>, vector<16x4xf32>
    %c0_1 = arith.constant 0 : index
    %c0_2 = arith.constant 0 : index
    %1 = vector.load %arg3[%c0_1, %c0_2] : memref<4x128xf32, #tpu.memory_space<vmem>>, vector<4x128xf32>
    %cst = arith.constant dense<0.000000e+00> : vector<16x128xf32>
    %2 = tpu.matmul %0, %1, %cst {dimension_numbers = #tpu.dot_dimension_numbers<[1], [0], [0], [1], [0, 0, 1, 1], [], []>} : vector<16x4xf32>, vector<4x128xf32>, vector<16x128xf32> -> vector<16x128xf32>
    %c0_3 = arith.constant 0 : index
    %c0_4 = arith.constant 0 : index
    %3 = vector.load %arg4[%c0_3, %c0_4] : memref<1x128xf32, #tpu.memory_space<vmem>>, vector<1x128xf32>
    %4 = vector.broadcast %3 : vector<1x128xf32> to vector<16x128xf32>
    %5 = arith.addf %2, %4 : vector<16x128xf32>
    %cst_5 = arith.constant 3.000000e+01 : f32
    %6 = vector.broadcast %cst_5 : f32 to vector<16x128xf32>
    %7 = arith.mulf %6, %5 : vector<16x128xf32>
    %8 = math.sin %7 : vector<16x128xf32>
    %c0_6 = arith.constant 0 : index
    %c0_7 = arith.constant 0 : index
    %9 = vector.load %arg5[%c0_6, %c0_7] : memref<16x128xf32, #tpu.memory_space<vmem>>, vector<16x128xf32>
    tpu.vector_store %arg5[%c0_6, %c0_7], %8 {strides = array<i32>} : memref<16x128xf32, #tpu.memory_space<vmem>>, vector<16x128xf32>,
    return
  }
  func.func @transform_0(%arg0: i32, %arg1: i32) -> (i32, i32) {
    %c0_i32 = arith.constant 0 : i32
    %c0_i32_0 = arith.constant 0 : i32
    return %arg0, %c0_i32 : i32, i32
  }
  func.func @transform_1(%arg0: i32, %arg1: i32) -> (i32, i32) {
    %c0_i32 = arith.constant 0 : i32
    %c0_i32_0 = arith.constant 0 : i32
    return %c0_i32, %arg1 : i32, i32
  }
  func.func @transform_2(%arg0: i32, %arg1: i32) -> (i32, i32) {
    %c0_i32 = arith.constant 0 : i32
    %c0_i32_0 = arith.constant 0 : i32
    return %c0_i32, %arg1 : i32, i32
  }
  func.func @transform_3(%arg0: i32, %arg1: i32) -> (i32, i32) {
    %c0_i32 = arith.constant 0 : i32
    return %arg0, %arg1 : i32, i32
  }
}

</mosaic_0001>

<bundles_post_ra>
// kernel: tpu_custom_call.1
= control target key start
LH: loop header
LB: loop body
LE: loop exit
PB: predicated region body
PF: predicated region fallthrough
CT: control target
= control target key end

     0   :  { %vm32_vm0 = vcmask 1043456   ;;  %vm25_vm1 = vcmask 31744   ;;  %s523_s0 = inlined_call_operand.vmem [shape: f32[16,4], index: 0, kind: input, shape index: {}]   ;;  %s524_s1 = inlined_call_operand.vmem [shape: f32[4,128], index: 1, kind: input, shape index: {}]   ;;  %s525_s2 = inlined_call_operand.vmem [shape: f32[1,128], index: 2, kind: input, shape index: {}]   ;;  %s526_s3 = inlined_call_operand.hbm [shape: f32[16,128], index: 3, kind: output, shape index: {}]  }
   0x1   :  { %v17_v0 = vld [vmem:[%s524_s1] sm:$0xf]  ;;  %v16_v2 = vld [vmem:[%s523_s0 + $0x8] sm:$0xff] }
   0x2   :  { %v15_v1 = vld [vmem:[%s523_s0] sm:$0xff]  ;;  %354 = vmatprep.subr.msk.mxu0 %vm32_vm0, %v17_v0 }
   0x3   :  { %356 = vmatprep.mubr.msk.f32.mxu0 %vm25_vm1, %v15_v1 }
   0x4   :  { %8 = vsyncpa [#allocation3], 0  ;;  %355 = vmatpush3.msk.msra.mxu0 %vm32_vm0, %v17_v0  ;;  %v339_v3 = vld [vmem:[%s525_s2] ss:$0 sm:$0xff]  ;;  %v408_v30 = vmov 683565275  }
   0x5   :  { %357 = vmatmul.mubr.msk.f32.vlgmr.msra.gmra.mrb[0].mxu0 %vm25_vm1, %v16_v2  ;;  %v409_v34 = vmov 2475754826   ;;  %v410_v36 = vmov 2131351028   ;;  %v411_v38 = vmov 2102212464  }
   0x6   :  { %v412_v40 = vmov 920167782   ;;  %v413_v47 = vmov 1326507024   ;;  %s414_s0 = smov [#allocation2]  }
   0x7   :  { %s328_s1 = sshll.u32 %s414_s0, 4  ;;  %s329_s1 = int_to_ptr.vmem [resolvable:$true] %s328_s1 }
   0x8   :  { %s384_s2 = scalar_lea.vmem %s329_s1, 256  ;;  %p389_p1 = scmp.lt.s32.totalorder %s329_s1, %s329_s1 }
   0x9   :  { %p385_p0 = scmp.ne.s32.totalorder %s329_s1, %s384_s2  ;;  %p390_p2 = scmp.lt.s32.totalorder %s384_s2, %s384_s2 }
   0xb   :  { %p391_p3 = por %p390_p2, %p389_p1 }
   0xd   :  { %p392_p4 = pnand %p391_p3, %p385_p0 }
  0xd8   :  { %v358_v4 = vpop.f32.mrb[0].mxu0 }
  0xd9   :  { %v108_v5 = vadd.f32 %v358_v4, %v339_v3  ;;  %v102_v6 = vpop.f32.mrb[1].mxu0 }
  0xda   :  { %v103_v7 = vadd.f32 %v339_v3, %v102_v6 }
  0xdb   :  { %v449_v8 = vmul.f32 30.0, %v108_v5 }
  0xdc   :  { %v451_v9 = vmul.f32 30.0, %v103_v7 }
  0xdd   :  { %v217_v10 = vand.u32 2147483647, %v449_v8  ;;  %v220_v11 = vand.u32 2139095040, %v449_v8  ;;  %vm219_vm0 = vcmp.lt.s32.totalorder %v449_v8, 0 }
  0xde   :  { %v116_v12 = vand.u32 2139095040, %v451_v9  ;;  %v113_v15 = vand.u32 2147483647, %v451_v9 }
  0xdf   :  { %v221_v13 = vshrl.u32 %v220_v11, 23  ;;  %v224_v14 = vand.u32 8388607, %v217_v10  ;;  %vm218_vm1 = vcmp.le.f32.partialorder %v217_v10, 0.7853982 }
  0xe0   :  { %v117_v16 = vshrl.u32 %v116_v12, 23  ;;  %v461_v21 = vand.u32 8388607, %v113_v15 }
  0xe1   :  { %v347_v17 = vadd.s32 4294967169, %v221_v13  ;;  %v225_v20 = vor.u32 8388608, %v224_v14 }
  0xe2   :  { %v343_v18 = vadd.s32 4294967169, %v117_v16  ;;  %v121_v28 = vor.u32 8388608, %v461_v21 }
  0xe3   :  { %v227_v19 = vadd.s32 1, %v347_v17  ;;  %v463_v27 = vshll.u32 %v225_v20, 8 }
  0xe4   :  { %v123_v22 = vadd.s32 1, %v343_v18 }
  0xe5   :  { %vm228_vm2 = vcmp.gt.s32.totalorder %v227_v19, 0 }
  0xe6   :  { %v229_v23 = vsel %vm228_vm2, %v227_v19, 0  ;;  %vm124_vm3 = vcmp.gt.s32.totalorder %v123_v22, 0  ;;  %vm115_vm2 = vcmp.lt.s32.totalorder %v451_v9, 0 }
  0xe7   :  { %v230_v24 = vshrl.u32 %v229_v23, 5  ;;  %v231_v25 = vand.u32 31, %v229_v23  ;;  %v125_v26 = vsel %vm124_vm3, %v123_v22, 0  ;;  %v161_v22 = vshll.u32 %v121_v28, 8 }
  0xe8   :  { %v466_v32 = vshrl.u32 %v125_v26, 5  ;;  %v127_v33 = vand.u32 31, %v125_v26  ;;  %vm114_vm3 = vcmp.le.f32.partialorder %v113_v15, 0.7853982 }
  0xe9   :  { %v232_v29 = vsub.s32 32, %v231_v25  ;;  %v234_v31 = vshll.u32 %v408_v30, %v231_v25  ;;  %v237_v35 = vshll.u32 %v409_v34, %v231_v25  ;;  %v240_v37 = vshll.u32 %v410_v36, %v231_v25 }
  0xea   :  { %v243_v39 = vshll.u32 %v411_v38, %v231_v25  ;;  %v246_v41 = vshll.u32 %v412_v40, %v231_v25  ;;  %vm249_vm4 = vcmp.lt.s32.totalorder %v230_v24, 1  ;;  %vm250_vm5 = vcmp.lt.s32.totalorder %v230_v24, 2 }
  0xeb   :  { %v235_v42 = vshrl.u32 %v409_v34, %v232_v29  ;;  %v238_v43 = vshrl.u32 %v410_v36, %v232_v29  ;;  %v241_v44 = vshrl.u32 %v411_v38, %v232_v29  ;;  %v233_v45 = vshrl.u32 %v408_v30, %v232_v29 }
  0xec   :  { %v244_v46 = vshrl.u32 %v412_v40, %v232_v29  ;;  %v247_v48 = vshrl.u32 %v413_v47, %v232_v29  ;;  %v128_v52 = vsub.s32 32, %v127_v33  ;;  %vm251_vm6 = vcmp.lt.s32.totalorder %v230_v24, 3 }
  0xed   :  { %v236_v49 = vor.u32 %v235_v42, %v234_v31  ;;  %v239_v50 = vor.u32 %v238_v43, %v237_v35  ;;  %v242_v51 = vor.u32 %v241_v44, %v240_v37  ;;  %vm252_vm7 = vcmp.lt.s32.totalorder %v230_v24, 4 }
  0xee   :  { %v245_v53 = vor.u32 %v244_v46, %v243_v39  ;;  %v248_v54 = vor.u32 %v247_v48, %v246_v41  ;;  %v130_v62 = vshll.u32 %v408_v30, %v127_v33  ;;  %v131_v1 = vshrl.u32 %v409_v34, %v128_v52 }
  0xef   :  { %v253_v55 = vsel %vm249_vm4, %v233_v45, %v236_v49  ;;  %v254_v56 = vsel %vm252_vm7, %v242_v51, 2102212464  ;;  %v257_v57 = vsel %vm249_vm4, %v236_v49, %v239_v50  ;;  %v261_v58 = vsel %vm249_vm4, %v239_v50, %v242_v51 }
  0xf0   :  { %v255_v59 = vsel %vm251_vm6, %v239_v50, %v254_v56  ;;  %v258_v60 = vsel %vm252_vm7, %v245_v53, 920167782  ;;  %v262_v61 = vsel %vm252_vm7, %v248_v54, 1326507024  ;;  %v133_v2 = vshll.u32 %v409_v34, %v127_v33 }
  0xf1   :  { %v259_v63 = vsel %vm251_vm6, %v242_v51, %v258_v60  ;;  %v263_v0 = vsel %vm251_vm6, %v245_v53, %v262_v61  ;;  %v256_v3 = vsel %vm250_vm5, %v253_v55, %v255_v59  ;;  %v134_v6 = vshrl.u32 %v410_v36, %v128_v52 }
  0xf2   :  { %v260_v4 = vsel %vm250_vm5, %v257_v57, %v259_v63  ;;  %v264_v5 = vsel %vm250_vm5, %v261_v58, %v263_v0  ;;  %v132_v14 = vor.u32 %v131_v1, %v130_v62  ;;  %v136_v17 = vshll.u32 %v410_v36, %v127_v33 }
  0xf3   :  { %v475_v7 = vmul.u32.u64.low %v463_v27, %v264_v5  ;;  %v476_v11 = vmul.u32.u64.high %v463_v27, %v264_v5, %v475_v7  ;;  %v479_v12 = vmul.u32.u64.low %v463_v27, %v260_v4  ;;  %v480_v13 = vmul.u32.u64.high %v463_v27, %v260_v4, %v479_v12 }
  0xf4   :  { %v135_v16 = vor.u32 %v134_v6, %v133_v2  ;;  %v137_v18 = vshrl.u32 %v411_v38, %v128_v52  ;;  %v139_v19 = vshll.u32 %v411_v38, %v127_v33  ;;  %v140_v20 = vshrl.u32 %v412_v40, %v128_v52 }
  0xf5   :  { %v143_v21 = vshrl.u32 %v413_v47, %v128_v52  ;;  %v272_v23 = vmul.u32 %v463_v27, %v256_v3  ;;  %v129_v24 = vshrl.u32 %v408_v30, %v128_v52  ;;  %v142_v26 = vshll.u32 %v412_v40, %v127_v33 }
  0xf6   :  { %v138_v25 = vor.u32 %v137_v18, %v136_v17  ;;  %vm274_vm8 = vc.u32 %v476_v11, %v479_v12  ;;  %v275_v29 = vadd.s32 1, %v480_v13  ;;  %v141_v31 = vor.u32 %v140_v20, %v139_v19 }
  0xf7   :  { %vm145_vm9 = vcmp.lt.s32.totalorder %v466_v32, 1  ;;  %v144_v34 = vor.u32 %v143_v21, %v142_v26  ;;  %vm147_vm10 = vcmp.lt.s32.totalorder %v466_v32, 3  ;;  %vm148_vm11 = vcmp.lt.s32.totalorder %v466_v32, 4 }
  0xf8   :  { %v153_v35 = vsel %vm145_vm9, %v132_v14, %v135_v16  ;;  %v276_v28 = vsel %vm274_vm8, %v275_v29, %v480_v13  ;;  %v150_v36 = vsel %vm148_vm11, %v138_v25, 2102212464  ;;  %v154_v27 = vsel %vm148_vm11, %v141_v31, 920167782 }
  0xf9   :  { %v157_v30 = vsel %vm145_vm9, %v135_v16, %v138_v25  ;;  %v277_v37 = vadd.s32 %v276_v28, %v272_v23  ;;  %vm146_vm12 = vcmp.lt.s32.totalorder %v466_v32, 2  ;;  %v155_v33 = vsel %vm147_vm10, %v138_v25, %v154_v27 }
  0xfa   :  { %v158_v38 = vsel %vm148_vm11, %v144_v34, 1326507024  ;;  %v149_v39 = vsel %vm145_vm9, %v129_v24, %v132_v14  ;;  %v151_v40 = vsel %vm147_vm10, %v135_v16, %v150_v36  ;;  %v156_v41 = vsel %vm146_vm12, %v153_v35, %v155_v33 }
  0xfb   :  { %v159_v42 = vsel %vm147_vm10, %v141_v31, %v158_v38  ;;  %v278_v43 = vadd.s32 536870912, %v277_v37  ;;  %v490_v45 = vmul.u32.u64.low %v161_v22, %v156_v41  ;;  %v491_v46 = vmul.u32.u64.high %v161_v22, %v156_v41, %v490_v45 }
  0xfc   :  { %v160_v44 = vsel %vm146_vm12, %v157_v30, %v159_v42  ;;  %v152_v50 = vsel %vm146_vm12, %v149_v39, %v151_v40  ;;  %v273_v2 = vadd.s32 %v479_v12, %v476_v11  ;;  %vm309_vm7 = vweird.f32 %v449_v8 }
  0xfd   :  { %v493_v47 = vmul.u32.u64.low %v161_v22, %v160_v44  ;;  %v494_v48 = vmul.u32.u64.high %v161_v22, %v160_v44, %v493_v47  ;;  %v279_v49 = vshrl.u32 %v278_v43, 30  ;;  %v171_v52 = vadd.s32 1, %v491_v46 }
  0xfe   :  { %v168_v32 = vmul.u32 %v161_v22, %v152_v50  ;;  %vm205_vm11 = vweird.f32 %v451_v9 }
  0xff   :  { %v280_v51 = vshll.u32 %v279_v49, 30  ;;  %vm170_vm13 = vc.u32 %v494_v48, %v490_v45  ;;  %v169_v23 = vadd.s32 %v490_v45, %v494_v48  ;;  %v303_v12 = vsub.s32 4, %v279_v49 }
 0x100   :  { %v172_v54 = vsel %vm170_vm13, %v171_v52, %v491_v46 }
 0x101   :  { %v281_v53 = vsub.s32 %v277_v37, %v280_v51  ;;  %v173_v55 = vadd.s32 %v172_v54, %v168_v32  ;;  %v304_v27 = vsel %vm219_vm0, %v303_v12, %v279_v49 }
 0x102   :  { %v306_v33 = vsel %vm218_vm1, 0, %v304_v27 }
 0x103   :  { %v283_v56 = vsub.s32 0, %v281_v53  ;;  %v174_v57 = vadd.s32 536870912, %v173_v55  ;;  %v310_v42 = vadd.s32 3, %v306_v33 }
 0x105   :  { %v348_v58 = vmin.u32 %v283_v56, %v281_v53  ;;  %v175_v59 = vshrl.u32 %v174_v57, 30  ;;  %v311_v46 = vand.u32 3, %v310_v42 }
 0x107   :  { %v285_v60 = vclz %v348_v58  ;;  %v176_v61 = vshll.u32 %v175_v59, 30  ;;  %v199_v41 = vsub.s32 4, %v175_v59  ;;  %vm316_vm4 = vcmp.eq.s32.totalorder %v311_v46, 2 }
 0x108   :  { %vm313_vm5 = vcmp.eq.s32.totalorder %v311_v46, 0  ;;  %vm312_vm6 = vcmp.lt.s32.totalorder %v311_v46, 2 }
 0x109   :  { %v349_v62 = vadd.s32 4294967294, %v285_v60  ;;  %v177_v63 = vsub.s32 %v173_v55, %v176_v61  ;;  %v200_v44 = vsel %vm115_vm2, %v199_v41, %v175_v59 }
 0x10a   :  { %v202_v48 = vsel %vm114_vm3, 0, %v200_v44 }
 0x10b   :  { %vm350_vm14 = vcmp.lt.s32.totalorder %v349_v62, 0  ;;  %v179_v1 = vsub.s32 0, %v177_v63  ;;  %v206_v52 = vadd.s32 3, %v202_v48 }
 0x10c   :  { %v288_v0 = vsel %vm350_vm14, 0, %v349_v62 }
 0x10d   :  { %v289_v3 = vsub.s32 32, %v288_v0  ;;  %v293_v4 = vsub.s32 4294967266, %v288_v0  ;;  %v344_v5 = vmin.u32 %v179_v1, %v177_v63  ;;  %v290_v6 = vshll.u32 %v281_v53, %v288_v0 }
 0x10e   :  { %v207_v55 = vand.u32 3, %v206_v52 }
 0x10f   :  { %v291_v7 = vshrl.u32 %v273_v2, %v289_v3  ;;  %v294_v13 = vadd.s32 127, %v293_v4  ;;  %v181_v14 = vclz %v344_v5 }
 0x110   :  { %vm212_vm8 = vcmp.eq.s32.totalorder %v207_v55, 2  ;;  %vm209_vm9 = vcmp.eq.s32.totalorder %v207_v55, 0  ;;  %vm208_vm10 = vcmp.lt.s32.totalorder %v207_v55, 2 }
 0x111   :  { %v292_v16 = vor.u32 %v291_v7, %v290_v6  ;;  %v295_v17 = vshll.u32 %v294_v13, 23  ;;  %v345_v18 = vadd.s32 4294967294, %v181_v14 }
 0x113   :  { %v296_v19 = vor.u32 4788187, %v295_v17  ;;  %vm346_vm15 = vcmp.lt.s32.totalorder %v345_v18, 0  ;;  %v299_v21 = vcvt.s32.f32 %v292_v16 }
 0x114   :  { %v184_v22 = vsel %vm346_vm15, 0, %v345_v18 }
 0x115   :  { %v297_v20 = vand.u32 2147483647, %v296_v19  ;;  %v185_v24 = vsub.s32 32, %v184_v22  ;;  %v189_v25 = vsub.s32 4294967266, %v184_v22  ;;  %v186_v26 = vshll.u32 %v177_v63, %v184_v22 }
 0x117   :  { %v300_v11 = vmul.f32 %v299_v21, %v297_v20  ;;  %v187_v29 = vshrl.u32 %v169_v23, %v185_v24  ;;  %v190_v31 = vadd.s32 127, %v189_v25 }
 0x119   :  { %v301_v34 = vxor.u32 2147483648, %v300_v11  ;;  %v188_v35 = vor.u32 %v187_v29, %v186_v26  ;;  %v191_v28 = vshll.u32 %v190_v31, 23 }
 0x11b   :  { %v302_v36 = vsel %vm219_vm0, %v301_v34, %v300_v11  ;;  %v192_v37 = vor.u32 4788187, %v191_v28  ;;  %v195_v39 = vcvt.s32.f32 %v188_v35 }
 0x11c   :  { %v305_v30 = vsel %vm218_vm1, %v449_v8, %v302_v36 }
 0x11d   :  { %376 = vcosq.f32 %v305_v30  ;;  %v193_v38 = vand.u32 2147483647, %v192_v37 }
 0x11e   :  { %378 = vsinq.f32 %v305_v30 }
 0x11f   :  { %v196_v40 = vmul.f32 %v195_v39, %v193_v38 }
 0x121   :  { %v197_v43 = vxor.u32 2147483648, %v196_v40 }
 0x123   :  { %v198_v10 = vsel %vm115_vm2, %v197_v43, %v196_v40 }
 0x124   :  { %v201_v45 = vsel %vm114_vm3, %v451_v9, %v198_v10 }
 0x125   :  { %380 = vcosq.f32 %v201_v45 }
 0x126   :  { %382 = vsinq.f32 %v201_v45 }
 0x127   :  { %v377_v47 = vpop.eup %376 }
 0x128   :  { %v379_v49 = vpop.eup %378  ;;  %v317_v50 = vxor.u32 2147483648, %v377_v47 }
 0x129   :  { %v314_v51 = vxor.u32 2147483648, %v379_v49 }
 0x12a   :  { %v318_v32 = vsel %vm316_vm4, %v317_v50, %v379_v49 }
 0x12b   :  { %v315_v53 = vsel %vm313_vm5, %v377_v47, %v314_v51 }
 0x12c   :  { %v319_v15 = vsel %vm312_vm6, %v315_v53, %v318_v32 }
 0x12d   :  { %v320_v54 = vsel %vm309_vm7, nan, %v319_v15 }
 0x12e   :  { %322 = vst [vmem:[#allocation2 + $0x8] sm:$0xff] %v320_v54 }
 0x12f   :  { %v381_v56 = vpop.eup %380 }
 0x130   :  { %v383_v57 = vpop.eup %382  ;;  %v213_v58 = vxor.u32 2147483648, %v381_v56 }
 0x131   :  { %v210_v59 = vxor.u32 2147483648, %v383_v57 }
 0x132   :  { %v214_v60 = vsel %vm212_vm8, %v213_v58, %v383_v57 }
 0x133   :  { %v211_v61 = vsel %vm209_vm9, %v381_v56, %v210_v59 }
 0x134   :  { %v215_v62 = vsel %vm208_vm10, %v211_v61, %v214_v60 }
 0x135   :  { %v216_v8 = vsel %vm205_vm11, nan, %v215_v62 }
 0x136   :  { %321 = vst [vmem:[#allocation2] sm:$0xff] %v216_v8 }
 0x137   :  { %395 = shalt.err (!%p392_p4)
}
 0x138   :  { %s396_s22 = scalar_lea.hbm %s526_s3, 256 }
 0x139   :  { %p397_p5 = scmp.ne.s32.totalorder %s526_s3, %s396_s22  ;;  %p400_p6 = scmp.lt.u32.totalorder %s396_s22, %s526_s3 }
 0x13b   :  { %p402_p7 = pnand %p400_p6, %p397_p5 }
 0x13d   :  { %405 = shalt.err (!%p402_p7)
}
 0x13e   :  { %s415_s27 = smov 128   ;;  %s416_s28 = smov 8  }
 0x13f   :  { %334 = dma.vmem_to_hbm [thread:$0]  %s329_s1, 256, %s526_s3, [#allocation3], %s415_s27, %s415_s27, %s416_s28  }
 0x140   :  { %406 = dma.done.wait [#allocation3], 256  }
 0x141   :  { %407 = vsyncadd [#allocation3], 4294967040 }
 0x142   :  { %338 = vsyncpa [#allocation3], 1 }

</bundles_post_ra>
